<compile_context>
chip_gen: v6e
topology: v6e:2x2x1
jax: 0.10.0
libtpu: 0.0.40
codegen_flags: <defaults>
</compile_context>

<pallas_src>
import jax
import jax.numpy as jnp
from jax.experimental import pallas as pl
from jax.experimental.pallas import tpu as pltpu


def _round_up(x, m):
    return ((x + m - 1) // m) * m


def _discriminator_kernel(x_ref, w1_ref, b1_ref, w2_ref, b2_ref, o_ref):
    # x: [TB, Dp], w1: [Dp, H], b1: [1, H], w2 row: [1, H], b2: [1, 1] (SMEM)
    x = x_ref[...]
    # Linear 1 on the MXU with f32 accumulation.
    h = jnp.dot(x, w1_ref[...], preferred_element_type=jnp.float32) + b1_ref[...]
    # LeakyReLU(0.2): one VALU op (max(h, 0.2*h) is exact for slope < 1).
    h = jnp.maximum(h, 0.2 * h)
    # Linear 2 (out_features == 1): VPU multiply + cross-lane reduction instead
    # of a 1-wide MXU matmul; b2 is a scalar read from SMEM.
    logits = jnp.sum(h * w2_ref[...], axis=-1, keepdims=True) + b2_ref[0, 0]
    # Sigmoid (exact, matches PyTorch within f32).
    o_ref[...] = (1.0 / (1.0 + jnp.exp(-logits))).astype(o_ref.dtype)


def discriminator_forward(x, w1, b1, w2, b2, *, tile_b=512):
    """Fused Linear -> LeakyReLU(0.2) -> Linear -> Sigmoid.

    x:  [B, D] float32
    w1: [D, H] (pre-transposed), b1: [H] or [1, H]
    w2: [H, 1] or [H],           b2: scalar-like
    Returns [B, 1] float32 (same semantics as the PyTorch module).
    """
    B, D = x.shape
    H = w1.shape[1]

    b1 = jnp.asarray(b1, jnp.float32).reshape(1, H)
    w2_row = jnp.asarray(w2, jnp.float32).reshape(1, H)  # row form for lane-reduce
    b2 = jnp.asarray(b2, jnp.float32).reshape(1, 1)
    x = jnp.asarray(x, jnp.float32)
    w1 = jnp.asarray(w1, jnp.float32)

    # Pad the feature dim to a multiple of 128 (784 -> 896): lane-aligned K tiles
    # for the MXU and clean DMAs. Zero padding does not change the result.
    d_pad = _round_up(D, 128)
    if d_pad != D:
        x = jnp.pad(x, ((0, 0), (0, d_pad - D)))
        w1 = jnp.pad(w1, ((0, d_pad - D), (0, 0)))

    # Batch tile: multiple of 8 sublanes, capped by (padded) batch size.
    tb = min(_round_up(tile_b, 8), _round_up(B, 8))
    b_pad = _round_up(B, tb)
    if b_pad != B:
        x = jnp.pad(x, ((0, b_pad - B), (0, 0)))

    grid = (b_pad // tb,)

    out = pl.pallas_call(
        _discriminator_kernel,
        out_shape=jax.ShapeDtypeStruct((b_pad, 1), jnp.float32),
        grid=grid,
        in_specs=[
            pl.BlockSpec((tb, d_pad), lambda i: (i, 0)),          # x: streamed per tile
            pl.BlockSpec((d_pad, H), lambda i: (0, 0)),           # w1: VMEM-resident
            pl.BlockSpec((1, H), lambda i: (0, 0)),               # b1: VMEM-resident
            pl.BlockSpec((1, H), lambda i: (0, 0)),               # w2 row: VMEM-resident
            pl.BlockSpec(memory_space=pltpu.MemorySpace.SMEM),    # b2 scalar in SMEM
        ],
        out_specs=pl.BlockSpec((tb, 1), lambda i: (i, 0)),
        compiler_params=pltpu.CompilerParams(
            dimension_semantics=("parallel",),
        ),
    )(x, w1, b1, w2_row, b2)

    return out[:B]


def init_params(key, img_dim=28 * 28, hidden=128):
    """Deterministic PyTorch-style (uniform +/- 1/sqrt(fan_in)) init."""
    k1, k2, k3, k4 = jax.random.split(key, 4)
    bound1 = 1.0 / jnp.sqrt(img_dim)
    bound2 = 1.0 / jnp.sqrt(hidden)
    # Stored pre-transposed: [in_features, out_features]
    w1 = jax.random.uniform(k1, (img_dim, hidden), jnp.float32, -bound1, bound1)
    b1 = jax.random.uniform(k2, (1, hidden), jnp.float32, -bound1, bound1)
    w2 = jax.random.uniform(k3, (hidden, 1), jnp.float32, -bound2, bound2)
    b2 = jax.random.uniform(k4, (1, 1), jnp.float32, -bound2, bound2)
    return w1, b1, w2, b2


if __name__ == "__main__":
    key = jax.random.PRNGKey(0)
    k_x, k_p = jax.random.split(key)

    img_dim = 28 * 28
    hidden = 128
    batch = 20  # deliberately not a multiple of the tile to exercise batch padding

    x = jax.random.normal(k_x, (batch, img_dim), jnp.float32)
    w1, b1, w2, b2 = init_params(k_p, img_dim=img_dim, hidden=hidden)

    # Small tile here so the grid has multiple steps (20 -> padded 24, 3 tiles of 8);
    # production use would keep the default tile_b=512.
    out = discriminator_forward(x, w1, b1, w2, b2, tile_b=8)
    out = jax.block_until_ready(out)

    # Pure-JAX reference (same math, no Pallas).
    h_ref = x @ w1 + b1
    h_ref = jnp.where(h_ref > 0, h_ref, 0.2 * h_ref)
    ref = jax.nn.sigmoid(h_ref @ w2 + b2)

    assert out.shape == (batch, 1)
    assert jnp.allclose(out, ref, atol=1e-5, rtol=1e-5), float(jnp.max(jnp.abs(out - ref)))

    print("KERNEL_OK")
</pallas_src>

<mosaic_0001>
module attributes {stable_mosaic.version = 11 : i64} {
  func.func @_discriminator_kernel(%arg0: i32, %arg1: memref<8x896xf32, #tpu.memory_space<vmem>>, %arg2: memref<896x128xf32, #tpu.memory_space<vmem>>, %arg3: memref<1x128xf32, #tpu.memory_space<vmem>>, %arg4: memref<1x128xf32, #tpu.memory_space<vmem>>, %arg5: memref<1x1xf32, #tpu.memory_space<smem>>, %arg6: memref<8x1xf32, #tpu.memory_space<vmem>>) attributes {dimension_semantics = [#tpu.dimension_semantics<parallel>], iteration_bounds = array<i64: 3>, scalar_prefetch = 0 : i64, scratch_operands = 0 : i64, tpu.core_type = #tpu.core_type<tc>, window_params = [{transform_indices = @transform_0, window_bounds = array<i64: 8, 896>}, {pipeline_mode = #tpu.pipeline_mode<synchronous>, transform_indices = @transform_1, window_bounds = array<i64: 896, 128>}, {pipeline_mode = #tpu.pipeline_mode<synchronous>, transform_indices = @transform_2, window_bounds = array<i64: 1, 128>}, {pipeline_mode = #tpu.pipeline_mode<synchronous>, transform_indices = @transform_3, window_bounds = array<i64: 1, 128>}, {transform_indices = @transform_4, window_bounds = array<i64: 1, 1>}, {transform_indices = @transform_5, window_bounds = array<i64: 8, 1>}]} {
    %c0 = arith.constant 0 : index
    %c0_0 = arith.constant 0 : index
    %0 = vector.load %arg1[%c0, %c0_0] : memref<8x896xf32, #tpu.memory_space<vmem>>, vector<8x896xf32>
    %c0_1 = arith.constant 0 : index
    %c0_2 = arith.constant 0 : index
    %1 = vector.load %arg2[%c0_1, %c0_2] : memref<896x128xf32, #tpu.memory_space<vmem>>, vector<896x128xf32>
    %cst = arith.constant dense<0.000000e+00> : vector<8x128xf32>
    %2 = tpu.matmul %0, %1, %cst {dimension_numbers = #tpu.dot_dimension_numbers<[1], [0], [0], [1], [0, 0, 1, 1], [], []>} : vector<8x896xf32>, vector<896x128xf32>, vector<8x128xf32> -> vector<8x128xf32>
    %c0_3 = arith.constant 0 : index
    %c0_4 = arith.constant 0 : index
    %3 = vector.load %arg3[%c0_3, %c0_4] : memref<1x128xf32, #tpu.memory_space<vmem>>, vector<1x128xf32>
    %4 = vector.broadcast %3 : vector<1x128xf32> to vector<8x128xf32>
    %5 = arith.addf %2, %4 : vector<8x128xf32>
    %cst_5 = arith.constant 2.000000e-01 : f32
    %6 = vector.broadcast %cst_5 : f32 to vector<8x128xf32>
    %7 = arith.mulf %6, %5 : vector<8x128xf32>
    %8 = arith.maximumf %5, %7 : vector<8x128xf32>
    %c0_6 = arith.constant 0 : index
    %c0_7 = arith.constant 0 : index
    %9 = vector.load %arg4[%c0_6, %c0_7] : memref<1x128xf32, #tpu.memory_space<vmem>>, vector<1x128xf32>
    %10 = vector.broadcast %9 : vector<1x128xf32> to vector<8x128xf32>
    %11 = arith.mulf %8, %10 : vector<8x128xf32>
    %cst_8 = arith.constant dense<0.000000e+00> : vector<8xf32>
    %12 = vector.multi_reduction <add>, %11, %cst_8 [1] : vector<8x128xf32> to vector<8xf32>
    %13 = vector.shape_cast %12 : vector<8xf32> to vector<8x1xf32>
    %c0_9 = arith.constant 0 : index
    %c0_10 = arith.constant 0 : index
    %14 = memref.load %arg5[%c0_9, %c0_10] : memref<1x1xf32, #tpu.memory_space<smem>>
    %15 = vector.broadcast %14 : f32 to vector<8x1xf32>
    %16 = arith.addf %13, %15 : vector<8x1xf32>
    %cst_11 = arith.constant 0.000000e+00 : f32
    %17 = vector.broadcast %cst_11 : f32 to vector<8x1xf32>
    %18 = arith.subf %17, %16 : vector<8x1xf32>
    %19 = math.exp %18 : vector<8x1xf32>
    %cst_12 = arith.constant 1.000000e+00 : f32
    %20 = vector.broadcast %cst_12 : f32 to vector<8x1xf32>
    %21 = arith.addf %20, %19 : vector<8x1xf32>
    %cst_13 = arith.constant 1.000000e+00 : f32
    %22 = vector.broadcast %cst_13 : f32 to vector<8x1xf32>
    %23 = arith.divf %22, %21 : vector<8x1xf32>
    %c0_14 = arith.constant 0 : index
    %c0_15 = arith.constant 0 : index
    %24 = vector.load %arg6[%c0_14, %c0_15] : memref<8x1xf32, #tpu.memory_space<vmem>>, vector<8x1xf32>
    tpu.vector_store %arg6[%c0_14, %c0_15], %23 {strides = array<i32>} : memref<8x1xf32, #tpu.memory_space<vmem>>, vector<8x1xf32>,
    return
  }
  func.func @transform_0(%arg0: i32) -> (i32, i32) {
    %c0_i32 = arith.constant 0 : i32
    %c0_i32_0 = arith.constant 0 : i32
    return %arg0, %c0_i32 : i32, i32
  }
  func.func @transform_1(%arg0: i32) -> (i32, i32) {
    %c0_i32 = arith.constant 0 : i32
    %c0_i32_0 = arith.constant 0 : i32
    %c0_i32_1 = arith.constant 0 : i32
    return %c0_i32, %c0_i32_0 : i32, i32
  }
  func.func @transform_2(%arg0: i32) -> (i32, i32) {
    %c0_i32 = arith.constant 0 : i32
    %c0_i32_0 = arith.constant 0 : i32
    %c0_i32_1 = arith.constant 0 : i32
    return %c0_i32, %c0_i32_0 : i32, i32
  }
  func.func @transform_3(%arg0: i32) -> (i32, i32) {
    %c0_i32 = arith.constant 0 : i32
    %c0_i32_0 = arith.constant 0 : i32
    %c0_i32_1 = arith.constant 0 : i32
    return %c0_i32, %c0_i32_0 : i32, i32
  }
  func.func @transform_4(%arg0: i32) -> (i32, i32) {
    %c0_i32 = arith.constant 0 : i32
    %c0_i32_0 = arith.constant 0 : i32
    %c0_i32_1 = arith.constant 0 : i32
    return %c0_i32, %c0_i32_0 : i32, i32
  }
  func.func @transform_5(%arg0: i32) -> (i32, i32) {
    %c0_i32 = arith.constant 0 : i32
    %c0_i32_0 = arith.constant 0 : i32
    return %arg0, %c0_i32 : i32, i32
  }
}

</mosaic_0001>

<bundles_post_ra>
// kernel: tpu_custom_call.1
= control target key start
LH: loop header
LB: loop body
LE: loop exit
PB: predicated region body
PF: predicated region fallthrough
CT: control target
= control target key end

     0   :  { %s1273_s0 = inlined_call_operand.hbm [shape: f32[24,896], index: 0, kind: input, shape index: {}]   ;;  %s1274_s1 = inlined_call_operand.hbm [shape: f32[896,128], index: 1, kind: input, shape index: {}]   ;;  %s1275_s2 = inlined_call_operand.vmem [shape: f32[1,128], index: 2, kind: input, shape index: {}]   ;;  %s1276_s3 = inlined_call_operand.vmem [shape: f32[1,128], index: 3, kind: input, shape index: {}]   ;;  %s1277_s4 = inlined_call_operand.<no memory space> [shape: f32[1,1], index: 4, kind: input, shape index: {}]   ;;  %s1278_s5 = inlined_call_operand.vmem [shape: f32[24,1], index: 5, kind: output, shape index: {}]  }
   0x1   :  { %10 = sst [smem:[#allocation2]] %s1277_s4 }
   0x2   :  { %11 = vsyncpa [#allocation4], 0 }
   0x3   :  { %13 = vsyncpa [#allocation4 + $0x1], 0 }
   0x4   :  { %14 = vsyncpa [#allocation6], 0  ;;  %s1124_s20 = smov 0   ;;  %s1126_s21 = smov 0  }
   0x5   :  { %s1128_s22 = smov 0   ;;  %s1130_s23 = smov 0  }
   0x6 LB: > { %s1143_s4 = sadd.s32 4294967295, %s1083_s23   ;;  %p40_p0 = scmp.ne.s32.totalorder %s1075_s21, %s1071_s20  ;;  %s1083_s23 = sphi %s1130_s23, %s1293_s23   ;;  %s1079_s22 = sphi %s1128_s22, %s1292_s22   ;;  %s1075_s21 = sphi %s1126_s21, %s1291_s21   ;;  %s1071_s20 = sphi %s1124_s20, %s1290_s20  }
   0x7   : > { %p1279_p1 = scmp.eq.s32.totalorder %s1143_s4, 0  ;;  %p762_p2 = scmp.ge.s32.totalorder %s1083_s23, 1 }
   0x8   : > { %p161_p3 = scmp.lt.s32.totalorder %s1083_s23, 4  ;;  %s1085_s26 = smov [#allocation5]  }
   0x9   : > { %p1151_p4 = por %p1279_p1, %p40_p0  ;;  %s173_s27 = sshll.u32 %s1085_s26, 4  ;;  %s174_s27 = int_to_ptr.vmem [resolvable:$true] %s173_s27 }
   0xa   : > { %p1155_p5 = pnand %p762_p2, %p161_p3  ;;  %s1168_s29 = sadd.s32 1, %s1083_s23  }
   0xb   : > { %s1282_s24 = scalar_select %p1151_p4, 1, 0 }
   0xc   : > { %s1283_s25 = scalar_select %p1155_p5, 1, 0 }
   0xd   : > { %p939_p6 = pneg %p1155_p5  ;;  %s27_s30 = sadd.s32 1, %s1079_s22 }
   0xe   : > { %s24_s6 = ssub.s32 %s1083_s23, %s1168_s29  ;;  %s1002_s7 = scalar_lea.vmem %s174_s27, 14336 }
   0xf   : > { %p1163_p7 = pnand %p939_p6, %p1279_p1  ;;  %p1003_p9 = scmp.ne.s32.totalorder %s174_s27, %s1002_s7 }
  0x10   : > { %p1010_p12 = scmp.lt.s32.totalorder %s174_s27, %s174_s27  ;;  %p1011_p13 = scmp.lt.s32.totalorder %s1002_s7, %s1002_s7 }
  0x11   : > { %p993_p8 = pneg %p1163_p7 }
  0x12   : > { %p1012_p0 = por %p1011_p13, %p1010_p12 }
  0x13   : > { %p1005_p10 = pnand %p1003_p9, %p993_p8 }
  0x15   : > { %p1006_p11 = pneg %p1005_p10 }
  0x17   : > { %p1013_p2 = pnand %p1012_p0, %p1006_p11 }
  0x19   : > { %1016 = shalt.err (!%p1013_p2)
}
  0x1a   : > { %s1086_s8 = smov 128   ;;  %s1087_s9 = smov 8  }
  0x1b   : > { %942 = dma.hbm_to_vmem [thread:$0]  (!%p1163_p7), %s1274_s1, 14336, %s174_s27, [#allocation6], %s1086_s8, %s1086_s8, %s1087_s9  }
  0x1c   : > { %p25_p3 = scmp.eq.s32.totalorder %s24_s6, 0  ;;  %p34_p6 = scmp.ne.s32.totalorder %s1079_s22, %s1075_s21 }
  0x1d   : > { %p35_p8 = scmp.eq.s32.totalorder %s1083_s23, 0  ;;  %p948_p9 = scmp.lt.s32.totalorder %s1083_s23, 3 }
  0x1e   : > { %s1185_s12 = scalar_select %p25_p3, %s1079_s22, %s27_s30  }
  0x1f   : > { %p36_p10 = por %p35_p8, %p34_p6  ;;  %s196_s13 = sand.u32 1, %s1079_s22  }
  0x20   : > { %s930_s14 = smul.u32 56, %s196_s13  ;;  %s197_s27 = scalar_lea.sflag [#allocation4], %s196_s13 }
  0x21   : > { %s931_s15 = smul.u32 896, %s1083_s23  ;;  %p1189_p11 = pnand %p948_p9, %p36_p10 }
  0x22   : > { %s200_s20 = scalar_lea.vmem [#allocation3], %s930_s14  ;;  %s1022_s6 = scalar_lea.hbm %s1273_s0, 2688 }
  0x23   : > { %s1196_s19 = scalar_lea.hbm %s1273_s0, %s931_s15  ;;  %s208_s26 = sshll.u32 %s200_s20, 4  ;;  %s209_s26 = int_to_ptr.vmem [resolvable:$true] %s208_s26 }
  0x24   : > { %s1017_s28 = scalar_lea.hbm %s1196_s19, 896  ;;  %p1019_p12 = pneg %p1189_p11 }
  0x25   : > { %p1018_p7 = scmp.ne.s32.totalorder %s1196_s19, %s1017_s28  ;;  %p1023_p2 = scmp.lt.s32.totalorder %s1196_s19, %s1273_s0 }
  0x26   : > { %p1024_p3 = scmp.lt.s32.totalorder %s1022_s6, %s1017_s28 }
  0x27   : > { %p1020_p13 = pnand %p1019_p12, %p1018_p7 }
  0x28   : > { %p1025_p6 = por %p1024_p3, %p1023_p2 }
  0x29   : > { %p1021_p0 = pneg %p1020_p13 }
  0x2b   : > { %p1026_p8 = pnand %p1025_p6, %p1021_p0 }
  0x2d   : > { %1029 = shalt.err (!%p1026_p8)
}
  0x2e   : > { %s1030_s9 = scalar_lea.vmem %s209_s26, 896  ;;  %s1088_s10 = smov [#allocation3]  }
  0x2f   : > { %p1031_p9 = scmp.ne.s32.totalorder %s209_s26, %s1030_s9  ;;  %s1035_s11 = sshll.u32 %s1088_s10, 4  ;;  %s1036_s11 = int_to_ptr.vmem [resolvable:$false] %s1035_s11 }
  0x30   : > { %s1037_s13 = scalar_lea.vmem %s1036_s11, 1792  ;;  %p1038_p7 = scmp.lt.s32.totalorder %s209_s26, %s1036_s11 }
  0x31   : > { %p1033_p10 = pnand %p1031_p9, %p1019_p12  ;;  %p1039_p13 = scmp.lt.s32.totalorder %s1037_s13, %s1030_s9 }
  0x33   : > { %p1034_p1 = pneg %p1033_p10  ;;  %p1040_p4 = por %p1039_p13, %p1038_p7 }
  0x35   : > { %p1041_p5 = pnand %p1040_p4, %p1034_p1 }
  0x37   : > { %1044 = shalt.err (!%p1041_p5)
}
  0x38   : > { %946 = dma.hbm_to_vmem [thread:$0]  (!%p1189_p11), %s1196_s19, 896, %s209_s26, %s197_s27  }
  0x39   : > { %p1286_p0 = scmp.ne.s32.totalorder %s1283_s25, 0 }
  0x3a   : > { %s219_s14 = sand.u32 (!%p1286_p0), 1, %s1075_s21   ;;  %p1287_p12 = scmp.ne.s32.totalorder (!%p1286_p0), %s1282_s24, 0 }
  0x3b   : > { %217 = sbr.rel (%p1286_p0) target bundleno = 517 (0x205), region = 40  ;;  %s220_s17 = scalar_lea.sflag (!%p1286_p0), [#allocation4], %s219_s14 }
  0x3c   : > { %s932_s15 = smul.u32 (!%p1286_p0), 56, %s219_s14 }
  0x3e   : > { %s1215_s18 = scalar_lea.vmem (!%p1286_p0), [#allocation3], %s932_s15 }
  0x40   : > { %1062 = dma.done.wait (%p1287_p12), %s220_s17, 896  }
  0x41   : > { %1064 = vsyncadd (%p1287_p12), %s220_s17, 4294966400  ;;  %p1288_p1 = scmp.eq.s32.totalorder %s1143_s4, 0 }
  0x43   : > { %1066 = dma.done.wait (%p1288_p1), [#allocation6], 14336   ;;  %p1289_p4 = pmov %p1288_p1 }
  0x44   : > { %v295_v0 = vld [vmem:[#allocation5 + $0xf8] sm:$0xff]  ;;  %v294_v2 = vld [vmem:[#allocation5 + $0xf0] sm:$0xff]  ;;  %v293_v6 = vld [vmem:[#allocation5 + $0xe8] sm:$0xff]  ;;  %vm1090_vm0 = vmmov 0   ;;  %s675_s20 = sld [smem:[#allocation2]]  ;;  %p253_p5 = scmp.lt.s32.totalorder %s1143_s4, 2 }
  0x45   : > { %1068 = vsyncadd (%p1289_p4), [#allocation6], 4294952960  ;;  %v279_v1 = vld [vmem:[#allocation5 + $0x78] sm:$0xff]  ;;  %773 = vmatprep.subr.mxu0 %v295_v0  ;;  %v278_v4 = vld [vmem:[#allocation5 + $0x70] sm:$0xff]  ;;  %vm684_vm1 = vcmask 7168  }
  0x46   : > { %v327_v3 = vld [vmem:[#allocation5 + $0x1f8] sm:$0xff]  ;;  %774 = vmatpush3.msra.mxu0 %v279_v1  ;;  %v326_v7 = vld [vmem:[#allocation5 + $0x1f0] sm:$0xff]  ;;  %v277_v8 = vld [vmem:[#allocation5 + $0x68] sm:$0xff]  ;;  %s1295_s4 = smov (!%p253_p5, %s1143_s4), 2 }
  0x47   : > { %v311_v5 = vld [vmem:[#allocation5 + $0x178] sm:$0xff]  ;;  %808 = vmatprep.subr.mxu1 %v327_v3  ;;  %775 = vmatprep.subr.mxu0 %v294_v2  ;;  %v310_v9 = vld [vmem:[#allocation5 + $0x170] sm:$0xff]  ;;  %v325_v10 = vld [vmem:[#allocation5 + $0x1e8] sm:$0xff]  ;;  %s768_s26 = sshll.u32 %s1295_s4, 3 }
  0x48   : > { %809 = vmatpush3.msra.mxu1 %v311_v5  ;;  %776 = vmatpush3.msra.mxu0 %v278_v4  ;;  %v292_v11 = vld [vmem:[#allocation5 + $0xe0] sm:$0xff]  ;;  %v309_v12 = vld [vmem:[#allocation5 + $0x168] sm:$0xff]  ;;  %v291_v15 = vld [vmem:[#allocation5 + $0xd8] sm:$0xff]  ;;  %s256_s23 = scalar_lea.vmem %s1278_s5, %s768_s26 }
  0x49   : > { %810 = vmatprep.subr.mxu1 %v326_v7  ;;  %777 = vmatprep.subr.mxu0 %v293_v6  ;;  %v276_v13 = vld [vmem:[#allocation5 + $0x60] sm:$0xff]  ;;  %v275_v17 = vld [vmem:[#allocation5 + $0x58] sm:$0xff]  ;;  %v290_v19 = vld [vmem:[#allocation5 + $0xd0] sm:$0xff] }
  0x4a   : > { %811 = vmatpush3.msra.mxu1 %v310_v9  ;;  %v324_v14 = vld [vmem:[#allocation5 + $0x1e0] sm:$0xff]  ;;  %778 = vmatpush3.msra.mxu0 %v277_v8  ;;  %v323_v18 = vld [vmem:[#allocation5 + $0x1d8] sm:$0xff]  ;;  %v274_v21 = vld [vmem:[#allocation5 + $0x50] sm:$0xff] }
  0x4b   : > { %812 = vmatprep.subr.mxu1 %v325_v10  ;;  %v308_v16 = vld [vmem:[#allocation5 + $0x160] sm:$0xff]  ;;  %779 = vmatprep.subr.mxu0 %v292_v11  ;;  %v307_v20 = vld [vmem:[#allocation5 + $0x158] sm:$0xff]  ;;  %v322_v22 = vld [vmem:[#allocation5 + $0x1d0] sm:$0xff]  ;;  %v1089_v11 = vmov 0.0  }
  0x4c   : > { %813 = vmatpush3.msra.mxu1 %v309_v12  ;;  %780 = vmatpush3.msra.mxu0 %v276_v13  ;;  %v289_v23 = vld [vmem:[#allocation5 + $0xc8] sm:$0xff]  ;;  %v306_v24 = vld [vmem:[#allocation5 + $0x150] sm:$0xff]  ;;  %v288_v27 = vld [vmem:[#allocation5 + $0xc0] sm:$0xff] }
  0x4d   : > { %814 = vmatprep.subr.mxu1 %v324_v14  ;;  %781 = vmatprep.subr.mxu0 %v291_v15  ;;  %v273_v25 = vld [vmem:[#allocation5 + $0x48] sm:$0xff]  ;;  %v272_v29 = vld [vmem:[#allocation5 + $0x40] sm:$0xff]  ;;  %v287_v31 = vld [vmem:[#allocation5 + $0xb8] sm:$0xff] }
  0x4e   : > { %815 = vmatpush3.msra.mxu1 %v308_v16  ;;  %782 = vmatpush3.msra.mxu0 %v275_v17  ;;  %v321_v26 = vld [vmem:[#allocation5 + $0x1c8] sm:$0xff]  ;;  %v320_v30 = vld [vmem:[#allocation5 + $0x1c0] sm:$0xff]  ;;  %v271_v33 = vld [vmem:[#allocation5 + $0x38] sm:$0xff] }
  0x4f   : > { %816 = vmatprep.subr.mxu1 %v323_v18  ;;  %783 = vmatprep.subr.mxu0 %v290_v19  ;;  %v305_v28 = vld [vmem:[#allocation5 + $0x148] sm:$0xff]  ;;  %v304_v32 = vld [vmem:[#allocation5 + $0x140] sm:$0xff]  ;;  %v319_v34 = vld [vmem:[#allocation5 + $0x1b8] sm:$0xff] }
  0x50   : > { %817 = vmatpush3.msra.mxu1 %v307_v20  ;;  %784 = vmatpush3.msra.mxu0 %v274_v21  ;;  %v286_v35 = vld [vmem:[#allocation5 + $0xb0] sm:$0xff]  ;;  %v303_v36 = vld [vmem:[#allocation5 + $0x138] sm:$0xff]  ;;  %v285_v39 = vld [vmem:[#allocation5 + $0xa8] sm:$0xff] }
  0x51   : > { %818 = vmatprep.subr.mxu1 %v322_v22  ;;  %785 = vmatprep.subr.mxu0 %v289_v23  ;;  %v270_v37 = vld [vmem:[#allocation5 + $0x30] sm:$0xff]  ;;  %v269_v41 = vld [vmem:[#allocation5 + $0x28] sm:$0xff]  ;;  %v284_v43 = vld [vmem:[#allocation5 + $0xa0] sm:$0xff] }
  0x52   : > { %819 = vmatpush3.msra.mxu1 %v306_v24  ;;  %786 = vmatpush3.msra.mxu0 %v273_v25  ;;  %v318_v38 = vld [vmem:[#allocation5 + $0x1b0] sm:$0xff]  ;;  %v317_v42 = vld [vmem:[#allocation5 + $0x1a8] sm:$0xff]  ;;  %v268_v45 = vld [vmem:[#allocation5 + $0x20] sm:$0xff] }
  0x53   : > { %820 = vmatprep.subr.mxu1 %v321_v26  ;;  %787 = vmatprep.subr.mxu0 %v288_v27  ;;  %v302_v40 = vld [vmem:[#allocation5 + $0x130] sm:$0xff]  ;;  %v301_v44 = vld [vmem:[#allocation5 + $0x128] sm:$0xff]  ;;  %v316_v46 = vld [vmem:[#allocation5 + $0x1a0] sm:$0xff] }
  0x54   : > { %821 = vmatpush3.msra.mxu1 %v305_v28  ;;  %788 = vmatpush3.msra.mxu0 %v272_v29  ;;  %v283_v47 = vld [vmem:[#allocation5 + $0x98] sm:$0xff]  ;;  %v300_v48 = vld [vmem:[#allocation5 + $0x120] sm:$0xff]  ;;  %v282_v51 = vld [vmem:[#allocation5 + $0x90] sm:$0xff] }
  0x55   : > { %822 = vmatprep.subr.mxu1 %v320_v30  ;;  %789 = vmatprep.subr.mxu0 %v287_v31  ;;  %v267_v49 = vld [vmem:[#allocation5 + $0x18] sm:$0xff]  ;;  %v266_v53 = vld [vmem:[#allocation5 + $0x10] sm:$0xff]  ;;  %v281_v55 = vld [vmem:[#allocation5 + $0x88] sm:$0xff] }
  0x56   : > { %823 = vmatpush3.msra.mxu1 %v304_v32  ;;  %790 = vmatpush3.msra.mxu0 %v271_v33  ;;  %v315_v50 = vld [vmem:[#allocation5 + $0x198] sm:$0xff]  ;;  %v314_v54 = vld [vmem:[#allocation5 + $0x190] sm:$0xff]  ;;  %v265_v57 = vld [vmem:[#allocation5 + $0x8] sm:$0xff] }
  0x57   : > { %824 = vmatprep.subr.mxu1 %v319_v34  ;;  %791 = vmatprep.subr.mxu0 %v286_v35  ;;  %v299_v52 = vld [vmem:[#allocation5 + $0x118] sm:$0xff]  ;;  %v298_v56 = vld [vmem:[#allocation5 + $0x110] sm:$0xff]  ;;  %v313_v58 = vld [vmem:[#allocation5 + $0x188] sm:$0xff] }
  0x58   : > { %825 = vmatpush3.msra.mxu1 %v303_v36  ;;  %792 = vmatpush3.msra.mxu0 %v270_v37  ;;  %v280_v59 = vld [vmem:[#allocation5 + $0x80] sm:$0xff]  ;;  %v258_v60 = vld [vmem:[%s1215_s18 + $0x8] sm:$0xff]  ;;  %v297_v62 = vld [vmem:[#allocation5 + $0x108] sm:$0xff] }
  0x59   : > { %826 = vmatprep.subr.mxu1 %v318_v38  ;;  %793 = vmatprep.subr.mxu0 %v285_v39  ;;  %v264_v61 = vld [vmem:[#allocation5] sm:$0xff]  ;;  %v257_v63 = vld [vmem:[%s1215_s18] sm:$0xff]  ;;  %v359_v1 = vld [vmem:[#allocation5 + $0x2f8] sm:$0xff] }
  0x5a   : > { %827 = vmatpush3.msra.mxu1 %v302_v40  ;;  %794 = vmatpush3.msra.mxu0 %v269_v41  ;;  %v312_v0 = vld [vmem:[#allocation5 + $0x180] sm:$0xff]  ;;  %v343_v4 = vld [vmem:[#allocation5 + $0x278] sm:$0xff]  ;;  %v358_v6 = vld [vmem:[#allocation5 + $0x2f0] sm:$0xff] }
  0x5b   : > { %828 = vmatprep.subr.mxu1 %v317_v42  ;;  %795 = vmatprep.subr.mxu0 %v284_v43  ;;  %v296_v2 = vld [vmem:[#allocation5 + $0x100] sm:$0xff]  ;;  %v342_v7 = vld [vmem:[#allocation5 + $0x270] sm:$0xff]  ;;  %v357_v8 = vld [vmem:[#allocation5 + $0x2e8] sm:$0xff] }
  0x5c   : > { %829 = vmatpush3.msra.mxu1 %v301_v44  ;;  %796 = vmatpush3.msra.mxu0 %v268_v45  ;;  %v260_v3 = vld [vmem:[%s1215_s18 + $0x18] sm:$0xff]  ;;  %v259_v5 = vld [vmem:[%s1215_s18 + $0x10] sm:$0xff]  ;;  %v374_v13 = vld [vmem:[#allocation5 + $0x370] sm:$0xff] }
  0x5d   : > { %830 = vmatprep.subr.mxu1 %v316_v46  ;;  %797 = vmatprep.subr.mxu0 %v283_v47  ;;  %v375_v9 = vld [vmem:[#allocation5 + $0x378] sm:$0xff]  ;;  %v341_v10 = vld [vmem:[#allocation5 + $0x268] sm:$0xff]  ;;  %v356_v12 = vld [vmem:[#allocation5 + $0x2e0] sm:$0xff] }
  0x5e   : > { %831 = vmatpush3.msra.mxu1 %v300_v48  ;;  %798 = vmatpush3.msra.mxu0 %v267_v49  ;;  %v340_v14 = vld [vmem:[#allocation5 + $0x260] sm:$0xff]  ;;  %v355_v15 = vld [vmem:[#allocation5 + $0x2d8] sm:$0xff]  ;;  %v373_v16 = vld [vmem:[#allocation5 + $0x368] sm:$0xff] }
  0x5f   : > { %832 = vmatprep.subr.mxu1 %v315_v50  ;;  %799 = vmatprep.subr.mxu0 %v282_v51  ;;  %v339_v17 = vld [vmem:[#allocation5 + $0x258] sm:$0xff]  ;;  %v354_v18 = vld [vmem:[#allocation5 + $0x2d0] sm:$0xff]  ;;  %v372_v19 = vld [vmem:[#allocation5 + $0x360] sm:$0xff] }
  0x60   : > { %833 = vmatpush3.msra.mxu1 %v299_v52  ;;  %800 = vmatpush3.msra.mxu0 %v266_v53  ;;  %v338_v20 = vld [vmem:[#allocation5 + $0x250] sm:$0xff]  ;;  %v353_v21 = vld [vmem:[#allocation5 + $0x2c8] sm:$0xff]  ;;  %v371_v22 = vld [vmem:[#allocation5 + $0x358] sm:$0xff] }
  0x61   : > { %834 = vmatprep.subr.mxu1 %v314_v54  ;;  %801 = vmatprep.subr.mxu0 %v281_v55  ;;  %v337_v23 = vld [vmem:[#allocation5 + $0x248] sm:$0xff]  ;;  %v352_v24 = vld [vmem:[#allocation5 + $0x2c0] sm:$0xff]  ;;  %v370_v25 = vld [vmem:[#allocation5 + $0x350] sm:$0xff] }
  0x62   : > { %835 = vmatpush3.msra.mxu1 %v298_v56  ;;  %802 = vmatpush3.msra.mxu0 %v265_v57  ;;  %v336_v26 = vld [vmem:[#allocation5 + $0x240] sm:$0xff]  ;;  %v351_v27 = vld [vmem:[#allocation5 + $0x2b8] sm:$0xff]  ;;  %v369_v28 = vld [vmem:[#allocation5 + $0x348] sm:$0xff] }
  0x63   : > { %836 = vmatprep.subr.mxu1 %v313_v58  ;;  %803 = vmatprep.subr.mxu0 %v280_v59  ;;  %v335_v29 = vld [vmem:[#allocation5 + $0x238] sm:$0xff]  ;;  %v350_v30 = vld [vmem:[#allocation5 + $0x2b0] sm:$0xff]  ;;  %v368_v31 = vld [vmem:[#allocation5 + $0x340] sm:$0xff] }
  0x64   : > { %447 = vmatprep.mubr.f32.mxu0 %v258_v60  ;;  %804 = vmatpush3.msra.mxu0 %v264_v61  ;;  %v334_v32 = vld [vmem:[#allocation5 + $0x230] sm:$0xff]  ;;  %v349_v33 = vld [vmem:[#allocation5 + $0x2a8] sm:$0xff]  ;;  %v367_v34 = vld [vmem:[#allocation5 + $0x338] sm:$0xff] }
  0x65   : > { %837 = vmatpush3.msra.mxu1 %v297_v62  ;;  %448 = vmatmul.mubr.f32.vlgmr.msra.gmra.mxu0 %v257_v63  ;;  %v333_v35 = vld [vmem:[#allocation5 + $0x228] sm:$0xff]  ;;  %v348_v36 = vld [vmem:[#allocation5 + $0x2a0] sm:$0xff]  ;;  %v366_v37 = vld [vmem:[#allocation5 + $0x330] sm:$0xff] }
  0x66   : > { %838 = vmatprep.subr.mxu1 %v312_v0  ;;  %843 = vmatprep.subr.mxu0 %v359_v1  ;;  %v332_v38 = vld [vmem:[#allocation5 + $0x220] sm:$0xff]  ;;  %v347_v39 = vld [vmem:[#allocation5 + $0x298] sm:$0xff]  ;;  %v365_v40 = vld [vmem:[#allocation5 + $0x328] sm:$0xff] }
  0x67   : > { %839 = vmatpush3.msra.mxu1 %v296_v2  ;;  %517 = vmatprep.mubr.f32.mxu1 %v260_v3  ;;  %v331_v41 = vld [vmem:[#allocation5 + $0x218] sm:$0xff]  ;;  %v346_v42 = vld [vmem:[#allocation5 + $0x290] sm:$0xff]  ;;  %v364_v43 = vld [vmem:[#allocation5 + $0x320] sm:$0xff] }
  0x68   : > { %844 = vmatpush3.msra.mxu0 %v343_v4  ;;  %518 = vmatmul.mubr.f32.vlgmr.msra.gmra.mxu1 %v259_v5  ;;  %v330_v44 = vld [vmem:[#allocation5 + $0x210] sm:$0xff]  ;;  %v345_v45 = vld [vmem:[#allocation5 + $0x288] sm:$0xff]  ;;  %v363_v46 = vld [vmem:[#allocation5 + $0x318] sm:$0xff] }
  0x69   : > { %845 = vmatprep.subr.mxu0 %v358_v6  ;;  %895 = vmatprep.subr.mxu1 %v1089_v11  ;;  %v329_v47 = vld [vmem:[#allocation5 + $0x208] sm:$0xff]  ;;  %v344_v48 = vld [vmem:[#allocation5 + $0x280] sm:$0xff]  ;;  %v262_v49 = vld [vmem:[%s1215_s18 + $0x28] sm:$0xff] }
  0x6a   : > { %846 = vmatpush3.msra.mxu0 %v342_v7  ;;  %896 = vmatpush3.msra.mxu1 %v375_v9  ;;  %v328_v50 = vld [vmem:[#allocation5 + $0x200] sm:$0xff]  ;;  %v362_v51 = vld [vmem:[#allocation5 + $0x310] sm:$0xff]  ;;  %v361_v53 = vld [vmem:[#allocation5 + $0x308] sm:$0xff] }
  0x6b   : > { %847 = vmatprep.subr.mxu0 %v357_v8  ;;  %897 = vmatprep.subr.mxu1 %v1089_v11  ;;  %v261_v52 = vld [vmem:[%s1215_s18 + $0x20] sm:$0xff]  ;;  %v360_v54 = vld [vmem:[#allocation5 + $0x300] sm:$0xff] }
  0x6c   : > { %848 = vmatpush3.msra.mxu0 %v341_v10  ;;  %898 = vmatpush3.msra.mxu1 %v374_v13  ;;  %v263_v55 = vld [vmem:[%s1215_s18 + $0x30] sm:$0xff]  ;;  %v769_v60 = vld [vmem:[%s1275_s2] ss:$0 sm:$0xff] }
  0x6d   : > { %849 = vmatprep.subr.mxu0 %v356_v12  ;;  %899 = vmatprep.subr.mxu1 %v1089_v11  ;;  %v770_v9 = vld [vmem:[%s1276_s3] ss:$0 sm:$0xff]  ;;  %v676_v12 = vstv %s675_s20 }
  0x6e   : > { %850 = vmatpush3.msra.mxu0 %v340_v14  ;;  %900 = vmatpush3.msra.mxu1 %v373_v16 }
  0x6f   : > { %851 = vmatprep.subr.mxu0 %v355_v15  ;;  %901 = vmatprep.subr.mxu1 %v1089_v11 }
  0x70   : > { %852 = vmatpush3.msra.mxu0 %v339_v17  ;;  %902 = vmatpush3.msra.mxu1 %v372_v19 }
  0x71   : > { %853 = vmatprep.subr.mxu0 %v354_v18  ;;  %903 = vmatprep.subr.mxu1 %v1089_v11 }
  0x72   : > { %854 = vmatpush3.msra.mxu0 %v338_v20  ;;  %904 = vmatpush3.msra.mxu1 %v371_v22 }
  0x73   : > { %855 = vmatprep.subr.mxu0 %v353_v21  ;;  %905 = vmatprep.subr.mxu1 %v1089_v11 }
  0x74   : > { %856 = vmatpush3.msra.mxu0 %v337_v23  ;;  %906 = vmatpush3.msra.mxu1 %v370_v25 }
  0x75   : > { %857 = vmatprep.subr.mxu0 %v352_v24  ;;  %907 = vmatprep.subr.mxu1 %v1089_v11 }
  0x76   : > { %858 = vmatpush3.msra.mxu0 %v336_v26  ;;  %908 = vmatpush3.msra.mxu1 %v369_v28 }
  0x77   : > { %859 = vmatprep.subr.mxu0 %v351_v27  ;;  %909 = vmatprep.subr.mxu1 %v1089_v11 }
  0x78   : > { %860 = vmatpush3.msra.mxu0 %v335_v29  ;;  %910 = vmatpush3.msra.mxu1 %v368_v31 }
  0x79   : > { %861 = vmatprep.subr.mxu0 %v350_v30  ;;  %911 = vmatprep.subr.mxu1 %v1089_v11 }
  0x7a   : > { %862 = vmatpush3.msra.mxu0 %v334_v32  ;;  %912 = vmatpush3.msra.mxu1 %v367_v34 }
  0x7b   : > { %863 = vmatprep.subr.mxu0 %v349_v33  ;;  %913 = vmatprep.subr.mxu1 %v1089_v11 }
  0x7c   : > { %864 = vmatpush3.msra.mxu0 %v333_v35  ;;  %914 = vmatpush3.msra.mxu1 %v366_v37 }
  0x7d   : > { %865 = vmatprep.subr.mxu0 %v348_v36  ;;  %915 = vmatprep.subr.mxu1 %v1089_v11 }
  0x7e   : > { %866 = vmatpush3.msra.mxu0 %v332_v38  ;;  %916 = vmatpush3.msra.mxu1 %v365_v40 }
  0x7f   : > { %867 = vmatprep.subr.mxu0 %v347_v39  ;;  %917 = vmatprep.subr.mxu1 %v1089_v11 }
  0x80   : > { %868 = vmatpush3.msra.mxu0 %v331_v41  ;;  %918 = vmatpush3.msra.mxu1 %v364_v43 }
  0x81   : > { %869 = vmatprep.subr.mxu0 %v346_v42  ;;  %919 = vmatprep.subr.mxu1 %v1089_v11 }
  0x82   : > { %870 = vmatpush3.msra.mxu0 %v330_v44  ;;  %920 = vmatpush3.msra.mxu1 %v363_v46 }
  0x83   : > { %871 = vmatprep.subr.mxu0 %v345_v45  ;;  %921 = vmatprep.subr.mxu1 %v1089_v11 }
  0x84   : > { %872 = vmatpush3.msra.mxu0 %v329_v47  ;;  %587 = vmatprep.mubr.f32.mxu0 %v262_v49 }
  0x85   : > { %873 = vmatprep.subr.mxu0 %v344_v48  ;;  %922 = vmatpush3.msra.mxu1 %v362_v51 }
  0x86   : > { %874 = vmatpush3.msra.mxu0 %v328_v50  ;;  %923 = vmatprep.subr.mxu1 %v1089_v11 }
  0x87   : > { %588 = vmatmul.mubr.f32.vlgmr.msra.gmra.mxu0 %v261_v52  ;;  %924 = vmatpush3.msra.mxu1 %v361_v53 }
  0x88   : > { %927 = vmatprep.mubr.msk.f32.mxu1 %vm1090_vm0, %v1089_v11  ;;  %925 = vmatprep.subr.mxu1 %v1089_v11 }
  0x89   : > { %926 = vmatpush3.msra.mxu1 %v360_v54 }
  0x8a   : > { %928 = vmatmul.mubr.f32.vlgmr.msra.gmra.mxu1 %v263_v55 }
 0x125   : > { %v805_v56 = vpop.f32.mrf.mxu0 }
 0x127   : > { %v806_v57 = vpop.f32.mrf.mxu0 }
 0x128   : > { %v840_v58 = vpop.f32.mrf.mxu1  ;;  %v807_v59 = vadd.f32 %v806_v57, %v805_v56 }
 0x12a   : > { %v841_v61 = vpop.f32.mrf.mxu1  ;;  %v450_v62 = vadd.f32 %v807_v59, %v769_v60 }
 0x12b   : > { %v842_v63 = vadd.f32 %v841_v61, %v840_v58 }
 0x12d   : > { %v520_v2 = vadd.f32 %v842_v63, %v450_v62 }
 0x147   : > { %v875_v0 = vpop.f32.mrf.mxu0 }
 0x149   : > { %v876_v1 = vpop.f32.mrf.mxu0 }
 0x14a   : > { %v877_v3 = vadd.f32 %v876_v1, %v875_v0  ;;  %v659_v4 = vpop.f32.mrf.mxu1 }
 0x14c   : > { %v590_v5 = vadd.f32 %v877_v3, %v520_v2  ;;  %v929_v6 = vpop.f32.mrf.mxu1 }
 0x14e   : > { %v660_v7 = vadd.f32 %v659_v4, %v590_v5 }
 0x150   : > { %v663_v8 = vmul.f32 0.2, %v660_v7 }
 0x152   : > { %v664_v10 = vmax.f32 %v660_v7, %v663_v8 }
 0x154   : > { %v672_v11 = vmul.f32 %v770_v9, %v664_v10 }
 0x156   : > { %673 = vadd.xlane.f32.xlu0 %v672_v11 }
 0x1df   : > { %v674_v13 = vpop.xlane.xlu0 %673 }
 0x1e0   : > { %v677_v14 = vadd.f32 %v676_v12, %v674_v13 }
 0x1e2   : > { %v678_v15 = vsub.f32 0.0, %v677_v14 }
 0x1e4   : > { %v679_v16 = vmul.f32 1.442695, %v678_v15 }
 0x1e6   : > { %987 = vpow2.f32 %v679_v16 }
 0x1f3   : > { %v988_v17 = vpop.eup %987 }
 0x1f4   : > { %v681_v18 = vadd.f32 1.0, %v988_v17 }
 0x1f6   : > { %989 = vrcp.f32 %v681_v18 }
 0x203   : > { %v990_v19 = vpop.eup %989 }
 0x204   : > { %685 = vst.msk [vmem:[%s256_s23] sm:$0xff] %vm684_vm1, %v990_v19 }
 0x205 PF: > { %p17_p11 = scmp.ge.s32.totalorder %s1168_s29, 5   ;;  %s1290_s20 = smov %s1075_s21 }
 0x206   : > { %s1291_s21 = smov %s1079_s22  ;;  %s1292_s22 = smov %s1185_s12 }
 0x207   : > { %s1293_s23 = smov %s1168_s29  ;;  %19 = sbr.rel (!%p17_p11) target bundleno = 6 (0x6), region = 84 }
 0x20c   :  { %705 = vsyncpa [#allocation4], 1 }
 0x20d   :  { %707 = vsyncpa [#allocation4 + $0x1], 1 }
 0x20e   :  { %708 = vsyncpa [#allocation6], 1 }

</bundles_post_ra>
